<compile_context>
chip_gen: v6e
topology: v6e:2x2x1
jax: 0.10.0
libtpu: 0.0.40
codegen_flags: <defaults>
</compile_context>

<pallas_src>
import functools

import jax
import jax.numpy as jnp
from jax.experimental import pallas as pl
from jax.experimental.pallas import tpu as pltpu

BOOKS_DIM = 48
USERS_DIM = 48
FC_HIDDEN1 = 64
FC_HIDDEN2 = 32
FINAL = 1


def _fused_kernel(bidx_ref, uidx_ref, btab_ref, utab_ref,
                  w1b_ref, w1u_ref, b1_ref, w2_ref, b2_ref, w3_ref, b3_ref,
                  out_ref):
    f32 = jnp.float32
    tb = bidx_ref.shape[0]

    # ---- fused embedding gather: one-hot matmul against VMEM-resident tables.
    # TODO(synk): for vocabularies too large to keep VMEM-resident, replace the
    # one-hot gather with a manual DMA gather (memory_space=pl.ANY +
    # pltpu.make_async_copy driven by prefetched indices).
    bidx = bidx_ref[...]                                        # (TB, 1) int32
    uidx = uidx_ref[...]                                        # (TB, 1) int32
    btab = btab_ref[...].astype(f32)                            # (Vb, 48)
    utab = utab_ref[...].astype(f32)                            # (Vu, 48)
    oh_b = (bidx == jax.lax.broadcasted_iota(
        jnp.int32, (tb, btab.shape[0]), 1)).astype(f32)         # (TB, Vb)
    oh_u = (uidx == jax.lax.broadcasted_iota(
        jnp.int32, (tb, utab.shape[0]), 1)).astype(f32)         # (TB, Vu)
    eb = jnp.dot(oh_b, btab, preferred_element_type=f32)        # (TB, 48)
    eu = jnp.dot(oh_u, utab, preferred_element_type=f32)        # (TB, 48)

    # ---- Linear(96->64) as two K=48 matmuls (no lane concat) + bias + ReLU.
    # (dropout is identity at inference)
    h1 = (jnp.dot(eb, w1b_ref[...].astype(f32), preferred_element_type=f32)
          + jnp.dot(eu, w1u_ref[...].astype(f32), preferred_element_type=f32)
          + b1_ref[...].astype(f32))
    h1 = jnp.maximum(h1, 0.0)

    # ---- Linear(64->32) + bias + ReLU.
    h2 = jnp.dot(h1, w2_ref[...].astype(f32),
                 preferred_element_type=f32) + b2_ref[...].astype(f32)
    h2 = jnp.maximum(h2, 0.0)

    # ---- Linear(32->1): VPU multiply + lane reduction (no N=1 MXU matmul).
    r = jnp.sum(h2 * w3_ref[...].astype(f32), axis=-1, keepdims=True)  # (TB,1)
    out_ref[...] = (r + b3_ref[...].astype(f32)).astype(out_ref.dtype)


@functools.partial(jax.jit, static_argnames=("block_b",))
def book_recommender_forward(books, users, params, *, block_b=1024):
    """books, users: integer (B,). Returns float32 (B,) logits."""
    books = books.astype(jnp.int32)
    users = users.astype(jnp.int32)
    B = books.shape[0]
    tb = int(block_b)
    num_tiles = pl.cdiv(B, tb)
    b_pad = num_tiles * tb

    # pad the batch to a multiple of the tile size (index 0 rows are discarded)
    bidx = jnp.pad(books, (0, b_pad - B)).reshape(b_pad, 1)
    uidx = jnp.pad(users, (0, b_pad - B)).reshape(b_pad, 1)

    btab = params["book_emb"]            # (Vb, 48)   (f32 or bf16)
    utab = params["user_emb"]            # (Vu, 48)
    w1 = params["w1"]                    # (96, 64)
    w1b, w1u = w1[:BOOKS_DIM, :], w1[BOOKS_DIM:, :]
    b1, w2, b2 = params["b1"], params["w2"], params["b2"]
    w3_row = params["w3"].reshape(1, FC_HIDDEN2)   # (1, 32) for the VPU reduce
    b3 = params["b3"]                    # (1, 1)

    def tile_spec():                      # per-tile (TB, 1) block of indices
        return pl.BlockSpec((tb, 1), lambda i: (i, 0))

    def const_spec(arr):                  # grid-invariant -> stays VMEM-resident
        return pl.BlockSpec(arr.shape, lambda i: (0, 0))

    out = pl.pallas_call(
        _fused_kernel,
        out_shape=jax.ShapeDtypeStruct((b_pad, FINAL), jnp.float32),
        grid=(num_tiles,),
        in_specs=[
            tile_spec(), tile_spec(),
            const_spec(btab), const_spec(utab),
            const_spec(w1b), const_spec(w1u), const_spec(b1),
            const_spec(w2), const_spec(b2),
            const_spec(w3_row), const_spec(b3),
        ],
        out_specs=pl.BlockSpec((tb, FINAL), lambda i: (i, 0)),
        compiler_params=pltpu.CompilerParams(
            dimension_semantics=("parallel",)),
    )(bidx, uidx, btab, utab, w1b, w1u, b1, w2, b2, w3_row, b3)

    # torch.flatten(res): (B, 1) -> (B,), dropping padded rows.
    return out.reshape(-1)[:B]


def init_params(key, books_size, users_size):
    ks = jax.random.split(key, 8)

    def lin(kw, kb, fan_in, fan_out):
        # PyTorch nn.Linear default init: U(-1/sqrt(fan_in), 1/sqrt(fan_in))
        bound = 1.0 / jnp.sqrt(fan_in)
        w = jax.random.uniform(kw, (fan_in, fan_out), jnp.float32, -bound, bound)
        b = jax.random.uniform(kb, (1, fan_out), jnp.float32, -bound, bound)
        return w, b

    book_emb = jax.random.normal(ks[0], (books_size, BOOKS_DIM), jnp.float32)
    user_emb = jax.random.normal(ks[1], (users_size, USERS_DIM), jnp.float32)
    w1, b1 = lin(ks[2], ks[3], BOOKS_DIM + USERS_DIM, FC_HIDDEN1)
    w2, b2 = lin(ks[4], ks[5], FC_HIDDEN1, FC_HIDDEN2)
    w3, b3 = lin(ks[6], ks[7], FC_HIDDEN2, FINAL)
    return dict(book_emb=book_emb, user_emb=user_emb,
                w1=w1, b1=b1, w2=w2, b2=b2, w3=w3, b3=b3)


def _reference_forward(books, users, params):
    """Pure-JAX reference of the same forward pass (params upcast to f32)."""
    hp = jax.lax.Precision.HIGHEST
    f32 = jnp.float32
    eb = jnp.take(params["book_emb"].astype(f32), books, axis=0)
    eu = jnp.take(params["user_emb"].astype(f32), users, axis=0)
    x = jnp.concatenate([eb, eu], axis=-1)
    h1 = jnp.maximum(jnp.dot(x, params["w1"].astype(f32), precision=hp)
                     + params["b1"].astype(f32), 0.0)
    h2 = jnp.maximum(jnp.dot(h1, params["w2"].astype(f32), precision=hp)
                     + params["b2"].astype(f32), 0.0)
    res = jnp.dot(h2, params["w3"].astype(f32), precision=hp) \
        + params["b3"].astype(f32)
    return res.reshape(-1)


if __name__ == "__main__":
    key = jax.random.PRNGKey(0)
    books_size, users_size = 20, 15
    B = 8

    kparams, kb, ku = jax.random.split(key, 3)
    params = init_params(kparams, books_size, users_size)
    books = jax.random.randint(kb, (B,), 0, books_size, dtype=jnp.int32)
    users = jax.random.randint(ku, (B,), 0, users_size, dtype=jnp.int32)

    # f32-stored parameters
    out = book_recommender_forward(books, users, params, block_b=128)
    jax.block_until_ready(out)
    ref = _reference_forward(books, users, params)
    assert out.shape == (B,)
    assert jnp.allclose(out, ref, atol=1e-4, rtol=1e-4)

    # bf16-stored tables/weights (halves their HBM footprint on v6e/v7x); the
    # kernel upcasts to f32 internally, so this is also safe on v5e.
    params_bf16 = dict(params)
    for k in ("book_emb", "user_emb", "w1", "w2", "w3"):
        params_bf16[k] = params[k].astype(jnp.bfloat16)
    out_bf16 = book_recommender_forward(books, users, params_bf16, block_b=128)
    jax.block_until_ready(out_bf16)
    ref_bf16 = _reference_forward(books, users, params_bf16)
    assert jnp.allclose(out_bf16, ref_bf16, atol=1e-3, rtol=1e-3)

    print("KERNEL_OK")
</pallas_src>

<mosaic_0001>
module attributes {stable_mosaic.version = 11 : i64} {
  func.func @_fused_kernel(%arg0: i32, %arg1: memref<128x1xi32, #tpu.memory_space<vmem>>, %arg2: memref<128x1xi32, #tpu.memory_space<vmem>>, %arg3: memref<20x48xf32, #tpu.memory_space<vmem>>, %arg4: memref<15x48xf32, #tpu.memory_space<vmem>>, %arg5: memref<48x64xf32, #tpu.memory_space<vmem>>, %arg6: memref<48x64xf32, #tpu.memory_space<vmem>>, %arg7: memref<1x64xf32, #tpu.memory_space<vmem>>, %arg8: memref<64x32xf32, #tpu.memory_space<vmem>>, %arg9: memref<1x32xf32, #tpu.memory_space<vmem>>, %arg10: memref<1x32xf32, #tpu.memory_space<vmem>>, %arg11: memref<1x1xf32, #tpu.memory_space<vmem>>, %arg12: memref<128x1xf32, #tpu.memory_space<vmem>>) attributes {dimension_semantics = [#tpu.dimension_semantics<parallel>], iteration_bounds = array<i64: 1>, scalar_prefetch = 0 : i64, scratch_operands = 0 : i64, tpu.core_type = #tpu.core_type<tc>, window_params = [{transform_indices = @transform_0, window_bounds = array<i64: 128, 1>}, {transform_indices = @transform_1, window_bounds = array<i64: 128, 1>}, {pipeline_mode = #tpu.pipeline_mode<synchronous>, transform_indices = @transform_2, window_bounds = array<i64: 20, 48>}, {pipeline_mode = #tpu.pipeline_mode<synchronous>, transform_indices = @transform_3, window_bounds = array<i64: 15, 48>}, {pipeline_mode = #tpu.pipeline_mode<synchronous>, transform_indices = @transform_4, window_bounds = array<i64: 48, 64>}, {pipeline_mode = #tpu.pipeline_mode<synchronous>, transform_indices = @transform_5, window_bounds = array<i64: 48, 64>}, {pipeline_mode = #tpu.pipeline_mode<synchronous>, transform_indices = @transform_6, window_bounds = array<i64: 1, 64>}, {pipeline_mode = #tpu.pipeline_mode<synchronous>, transform_indices = @transform_7, window_bounds = array<i64: 64, 32>}, {pipeline_mode = #tpu.pipeline_mode<synchronous>, transform_indices = @transform_8, window_bounds = array<i64: 1, 32>}, {pipeline_mode = #tpu.pipeline_mode<synchronous>, transform_indices = @transform_9, window_bounds = array<i64: 1, 32>}, {pipeline_mode = #tpu.pipeline_mode<synchronous>, transform_indices = @transform_10, window_bounds = array<i64: 1, 1>}, {transform_indices = @transform_11, window_bounds = array<i64: 128, 1>}]} {
    %c0 = arith.constant 0 : index
    %c0_0 = arith.constant 0 : index
    %0 = vector.load %arg1[%c0, %c0_0] : memref<128x1xi32, #tpu.memory_space<vmem>>, vector<128x1xi32>
    %c0_1 = arith.constant 0 : index
    %c0_2 = arith.constant 0 : index
    %1 = vector.load %arg2[%c0_1, %c0_2] : memref<128x1xi32, #tpu.memory_space<vmem>>, vector<128x1xi32>
    %c0_3 = arith.constant 0 : index
    %c0_4 = arith.constant 0 : index
    %2 = vector.load %arg3[%c0_3, %c0_4] : memref<20x48xf32, #tpu.memory_space<vmem>>, vector<20x48xf32>
    %c0_5 = arith.constant 0 : index
    %c0_6 = arith.constant 0 : index
    %3 = vector.load %arg4[%c0_5, %c0_6] : memref<15x48xf32, #tpu.memory_space<vmem>>, vector<15x48xf32>
    %4 = tpu.iota {dimensions = array<i32: 1>} : vector<128x20xi32>
    %5 = vector.broadcast %0 : vector<128x1xi32> to vector<128x20xi32>
    %6 = arith.cmpi eq, %5, %4 : vector<128x20xi32>
    %7 = arith.extui %6 : vector<128x20xi1> to vector<128x20xi32>
    %8 = arith.sitofp %7 : vector<128x20xi32> to vector<128x20xf32>
    %9 = tpu.iota {dimensions = array<i32: 1>} : vector<128x15xi32>
    %10 = vector.broadcast %1 : vector<128x1xi32> to vector<128x15xi32>
    %11 = arith.cmpi eq, %10, %9 : vector<128x15xi32>
    %12 = arith.extui %11 : vector<128x15xi1> to vector<128x15xi32>
    %13 = arith.sitofp %12 : vector<128x15xi32> to vector<128x15xf32>
    %cst = arith.constant dense<0.000000e+00> : vector<128x48xf32>
    %14 = tpu.matmul %8, %2, %cst {dimension_numbers = #tpu.dot_dimension_numbers<[1], [0], [0], [1], [0, 0, 1, 1], [], []>} : vector<128x20xf32>, vector<20x48xf32>, vector<128x48xf32> -> vector<128x48xf32>
    %cst_7 = arith.constant dense<0.000000e+00> : vector<128x48xf32>
    %15 = tpu.matmul %13, %3, %cst_7 {dimension_numbers = #tpu.dot_dimension_numbers<[1], [0], [0], [1], [0, 0, 1, 1], [], []>} : vector<128x15xf32>, vector<15x48xf32>, vector<128x48xf32> -> vector<128x48xf32>
    %c0_8 = arith.constant 0 : index
    %c0_9 = arith.constant 0 : index
    %16 = vector.load %arg5[%c0_8, %c0_9] : memref<48x64xf32, #tpu.memory_space<vmem>>, vector<48x64xf32>
    %cst_10 = arith.constant dense<0.000000e+00> : vector<128x64xf32>
    %17 = tpu.matmul %14, %16, %cst_10 {dimension_numbers = #tpu.dot_dimension_numbers<[1], [0], [0], [1], [0, 0, 1, 1], [], []>} : vector<128x48xf32>, vector<48x64xf32>, vector<128x64xf32> -> vector<128x64xf32>
    %c0_11 = arith.constant 0 : index
    %c0_12 = arith.constant 0 : index
    %18 = vector.load %arg6[%c0_11, %c0_12] : memref<48x64xf32, #tpu.memory_space<vmem>>, vector<48x64xf32>
    %cst_13 = arith.constant dense<0.000000e+00> : vector<128x64xf32>
    %19 = tpu.matmul %15, %18, %cst_13 {dimension_numbers = #tpu.dot_dimension_numbers<[1], [0], [0], [1], [0, 0, 1, 1], [], []>} : vector<128x48xf32>, vector<48x64xf32>, vector<128x64xf32> -> vector<128x64xf32>
    %20 = arith.addf %17, %19 : vector<128x64xf32>
    %c0_14 = arith.constant 0 : index
    %c0_15 = arith.constant 0 : index
    %21 = vector.load %arg7[%c0_14, %c0_15] : memref<1x64xf32, #tpu.memory_space<vmem>>, vector<1x64xf32>
    %22 = vector.broadcast %21 : vector<1x64xf32> to vector<128x64xf32>
    %23 = arith.addf %20, %22 : vector<128x64xf32>
    %cst_16 = arith.constant 0.000000e+00 : f32
    %24 = vector.broadcast %cst_16 : f32 to vector<128x64xf32>
    %25 = arith.maximumf %23, %24 : vector<128x64xf32>
    %c0_17 = arith.constant 0 : index
    %c0_18 = arith.constant 0 : index
    %26 = vector.load %arg8[%c0_17, %c0_18] : memref<64x32xf32, #tpu.memory_space<vmem>>, vector<64x32xf32>
    %cst_19 = arith.constant dense<0.000000e+00> : vector<128x32xf32>
    %27 = tpu.matmul %25, %26, %cst_19 {dimension_numbers = #tpu.dot_dimension_numbers<[1], [0], [0], [1], [0, 0, 1, 1], [], []>} : vector<128x64xf32>, vector<64x32xf32>, vector<128x32xf32> -> vector<128x32xf32>
    %c0_20 = arith.constant 0 : index
    %c0_21 = arith.constant 0 : index
    %28 = vector.load %arg9[%c0_20, %c0_21] : memref<1x32xf32, #tpu.memory_space<vmem>>, vector<1x32xf32>
    %29 = vector.broadcast %28 : vector<1x32xf32> to vector<128x32xf32>
    %30 = arith.addf %27, %29 : vector<128x32xf32>
    %cst_22 = arith.constant 0.000000e+00 : f32
    %31 = vector.broadcast %cst_22 : f32 to vector<128x32xf32>
    %32 = arith.maximumf %30, %31 : vector<128x32xf32>
    %c0_23 = arith.constant 0 : index
    %c0_24 = arith.constant 0 : index
    %33 = vector.load %arg10[%c0_23, %c0_24] : memref<1x32xf32, #tpu.memory_space<vmem>>, vector<1x32xf32>
    %34 = vector.broadcast %33 : vector<1x32xf32> to vector<128x32xf32>
    %35 = arith.mulf %32, %34 : vector<128x32xf32>
    %cst_25 = arith.constant dense<0.000000e+00> : vector<128xf32>
    %36 = vector.multi_reduction <add>, %35, %cst_25 [1] : vector<128x32xf32> to vector<128xf32>
    %37 = vector.shape_cast %36 : vector<128xf32> to vector<128x1xf32>
    %c0_26 = arith.constant 0 : index
    %c0_27 = arith.constant 0 : index
    %38 = vector.load %arg11[%c0_26, %c0_27] : memref<1x1xf32, #tpu.memory_space<vmem>>, vector<1x1xf32>
    %39 = vector.broadcast %38 : vector<1x1xf32> to vector<128x1xf32>
    %40 = arith.addf %37, %39 : vector<128x1xf32>
    %c0_28 = arith.constant 0 : index
    %c0_29 = arith.constant 0 : index
    %41 = vector.load %arg12[%c0_28, %c0_29] : memref<128x1xf32, #tpu.memory_space<vmem>>, vector<128x1xf32>
    tpu.vector_store %arg12[%c0_28, %c0_29], %40 {strides = array<i32>} : memref<128x1xf32, #tpu.memory_space<vmem>>, vector<128x1xf32>,
    return
  }
  func.func @transform_0(%arg0: i32) -> (i32, i32) {
    %c0_i32 = arith.constant 0 : i32
    %c0_i32_0 = arith.constant 0 : i32
    return %arg0, %c0_i32 : i32, i32
  }
  func.func @transform_1(%arg0: i32) -> (i32, i32) {
    %c0_i32 = arith.constant 0 : i32
    %c0_i32_0 = arith.constant 0 : i32
    return %arg0, %c0_i32 : i32, i32
  }
  func.func @transform_2(%arg0: i32) -> (i32, i32) {
    %c0_i32 = arith.constant 0 : i32
    %c0_i32_0 = arith.constant 0 : i32
    %c0_i32_1 = arith.constant 0 : i32
    return %c0_i32, %c0_i32_0 : i32, i32
  }
  func.func @transform_3(%arg0: i32) -> (i32, i32) {
    %c0_i32 = arith.constant 0 : i32
    %c0_i32_0 = arith.constant 0 : i32
    %c0_i32_1 = arith.constant 0 : i32
    return %c0_i32, %c0_i32_0 : i32, i32
  }
  func.func @transform_4(%arg0: i32) -> (i32, i32) {
    %c0_i32 = arith.constant 0 : i32
    %c0_i32_0 = arith.constant 0 : i32
    %c0_i32_1 = arith.constant 0 : i32
    return %c0_i32, %c0_i32_0 : i32, i32
  }
  func.func @transform_5(%arg0: i32) -> (i32, i32) {
    %c0_i32 = arith.constant 0 : i32
    %c0_i32_0 = arith.constant 0 : i32
    %c0_i32_1 = arith.constant 0 : i32
    return %c0_i32, %c0_i32_0 : i32, i32
  }
  func.func @transform_6(%arg0: i32) -> (i32, i32) {
    %c0_i32 = arith.constant 0 : i32
    %c0_i32_0 = arith.constant 0 : i32
    %c0_i32_1 = arith.constant 0 : i32
    return %c0_i32, %c0_i32_0 : i32, i32
  }
  func.func @transform_7(%arg0: i32) -> (i32, i32) {
    %c0_i32 = arith.constant 0 : i32
    %c0_i32_0 = arith.constant 0 : i32
    %c0_i32_1 = arith.constant 0 : i32
    return %c0_i32, %c0_i32_0 : i32, i32
  }
  func.func @transform_8(%arg0: i32) -> (i32, i32) {
    %c0_i32 = arith.constant 0 : i32
    %c0_i32_0 = arith.constant 0 : i32
    %c0_i32_1 = arith.constant 0 : i32
    return %c0_i32, %c0_i32_0 : i32, i32
  }
  func.func @transform_9(%arg0: i32) -> (i32, i32) {
    %c0_i32 = arith.constant 0 : i32
    %c0_i32_0 = arith.constant 0 : i32
    %c0_i32_1 = arith.constant 0 : i32
    return %c0_i32, %c0_i32_0 : i32, i32
  }
  func.func @transform_10(%arg0: i32) -> (i32, i32) {
    %c0_i32 = arith.constant 0 : i32
    %c0_i32_0 = arith.constant 0 : i32
    %c0_i32_1 = arith.constant 0 : i32
    return %c0_i32, %c0_i32_0 : i32, i32
  }
  func.func @transform_11(%arg0: i32) -> (i32, i32) {
    %c0_i32 = arith.constant 0 : i32
    %c0_i32_0 = arith.constant 0 : i32
    return %arg0, %c0_i32 : i32, i32
  }
}

</mosaic_0001>

<bundles_post_ra>
// kernel: book_recommender_forward.1
= control target key start
LH: loop header
LB: loop body
LE: loop exit
PB: predicated region body
PF: predicated region fallthrough
CT: control target
= control target key end

     0   :  { %v1855_v0 = vmov 0   ;;  %vm518_vm0 = vcmask 1046528   ;;  %vm320_vm1 = vcmask 1043456   ;;  %v77_v39 = vlaneseq  ;;  %s2388_s1 = inlined_call_operand.vmem [shape: s32[128,1], index: 1, kind: input, shape index: {}]   ;;  %s2389_s3 = inlined_call_operand.vmem [shape: f32[15,48], index: 3, kind: input, shape index: {}]   ;;  %s2390_s2 = inlined_call_operand.vmem [shape: f32[20,48], index: 2, kind: input, shape index: {}]   ;;  %s2391_s0 = inlined_call_operand.vmem [shape: s32[128,1], index: 0, kind: input, shape index: {}]   ;;  %s2392_s5 = inlined_call_operand.vmem [shape: f32[48,64], index: 5, kind: input, shape index: {}]   ;;  %s2393_s4 = inlined_call_operand.vmem [shape: f32[48,64], index: 4, kind: input, shape index: {}]   ;;  %s2394_s7 = inlined_call_operand.vmem [shape: f32[64,32], index: 7, kind: input, shape index: {}]   ;;  %s2395_s6 = inlined_call_operand.vmem [shape: f32[1,64], index: 6, kind: input, shape index: {}]   ;;  %s2396_s10 = inlined_call_operand.<no memory space> [shape: f32[1,1], index: 10, kind: input, shape index: {}]   ;;  %s2397_s8 = inlined_call_operand.vmem [shape: f32[1,32], index: 8, kind: input, shape index: {}]   ;;  %s2398_s9 = inlined_call_operand.vmem [shape: f32[1,32], index: 9, kind: input, shape index: {}]   ;;  %s2399_s11 = inlined_call_operand.vmem [shape: f32[128,1], index: 11, kind: output, shape index: {}]  }
   0x1   :  { %1854 = vset.pattern.permute.xlu1 %v1855_v0  ;;  %1853 = vset.pattern.permute.xlu0 %v1855_v0  ;;  %v58_v1 = vld [vmem:[%s2388_s1 + $0x10] sm:$0xff]  ;;  %v56_v2 = vld [vmem:[%s2388_s1] sm:$0xff]  ;;  %v59_v3 = vld [vmem:[%s2388_s1 + $0x18] sm:$0xff]  ;;  %vm469_vm2 = vcmask 121856   ;;  %v1856_v43 = vmov 0.0   ;;  %vm271_vm11 = vcmask 162816  }
   0x2   :  { %182 = vperm.xlu1 %1854, %v58_v1   ;;  %176 = vperm.xlu0 %1853, %v56_v2   ;;  %v57_v4 = vld [vmem:[%s2388_s1 + $0x8] sm:$0xff]  ;;  %v60_v6 = vld [vmem:[%s2388_s1 + $0x20] sm:$0xff]  ;;  %v63_v7 = vld [vmem:[%s2388_s1 + $0x38] sm:$0xff]  ;;  %v2037_v40 = vand.u32 127, %v77_v39 }
   0x3   :  { %v61_v5 = vld [vmem:[%s2388_s1 + $0x28] sm:$0xff]  ;;  %v62_v8 = vld [vmem:[%s2388_s1 + $0x30] sm:$0xff]  ;;  %v75_v10 = vld [vmem:[%s2389_s3] sm:$0xff] }
   0x4   :  { %v76_v9 = vld [vmem:[%s2389_s3 + $0x8] sm:$0x7f]  ;;  %v74_v11 = vld [vmem:[%s2390_s2 + $0x10] sm:$0xf]  ;;  %v40_v14 = vld [vmem:[%s2391_s0] sm:$0xff] }
   0x5   :  { %1699 = vmatprep.subr.msk.mxu1 %vm518_vm0, %v76_v9  ;;  %1669 = vmatprep.subr.msk.mxu0 %vm320_vm1, %v74_v11  ;;  %v73_v12 = vld [vmem:[%s2390_s2 + $0x8] sm:$0xff]  ;;  %v72_v15 = vld [vmem:[%s2390_s2] sm:$0xff]  ;;  %v43_v16 = vld [vmem:[%s2391_s0 + $0x18] sm:$0xff] }
   0x6   :  { %185 = vperm.xlu1 %1854, %v59_v3   ;;  %179 = vperm.xlu0 %1853, %v57_v4   ;;  %v41_v13 = vld [vmem:[%s2391_s0 + $0x8] sm:$0xff]  ;;  %v42_v17 = vld [vmem:[%s2391_s0 + $0x10] sm:$0xff]  ;;  %v44_v19 = vld [vmem:[%s2391_s0 + $0x20] sm:$0xff] }
   0x7   :  { %1700 = vmatpush3.msk.msra.mxu1 %vm518_vm0, %v76_v9  ;;  %1670 = vmatpush3.msk.msra.mxu0 %vm320_vm1, %v74_v11  ;;  %v45_v18 = vld [vmem:[%s2391_s0 + $0x28] sm:$0xff]  ;;  %v47_v20 = vld [vmem:[%s2391_s0 + $0x38] sm:$0xff]  ;;  %v46_v21 = vld [vmem:[%s2391_s0 + $0x30] sm:$0xff] }
   0x8   :  { %1701 = vmatprep.subr.mxu1 %v75_v10  ;;  %1671 = vmatprep.subr.mxu0 %v73_v12  ;;  %v64_v22 = vld [vmem:[%s2388_s1 + $0x40] sm:$0xff]  ;;  %v65_v24 = vld [vmem:[%s2388_s1 + $0x48] sm:$0xff]  ;;  %v66_v26 = vld [vmem:[%s2388_s1 + $0x50] sm:$0xff] }
   0x9   :  { %1702 = vmatpush3.msra.mxu1 %v75_v10  ;;  %1672 = vmatpush3.msra.mxu0 %v73_v12  ;;  %v48_v23 = vld [vmem:[%s2391_s0 + $0x40] sm:$0xff]  ;;  %v49_v25 = vld [vmem:[%s2391_s0 + $0x48] sm:$0xff]  ;;  %v50_v27 = vld [vmem:[%s2391_s0 + $0x50] sm:$0xff] }
   0xa   :  { %191 = vperm.xlu1 %1854, %v61_v5   ;;  %188 = vperm.xlu0 %1853, %v60_v6   ;;  %v67_v28 = vld [vmem:[%s2388_s1 + $0x58] sm:$0xff]  ;;  %v68_v30 = vld [vmem:[%s2388_s1 + $0x60] sm:$0xff]  ;;  %v69_v32 = vld [vmem:[%s2388_s1 + $0x68] sm:$0xff] }
   0xb   :  { %1673 = vmatprep.subr.mxu0 %v72_v15  ;;  %v51_v29 = vld [vmem:[%s2391_s0 + $0x58] sm:$0xff]  ;;  %v52_v31 = vld [vmem:[%s2391_s0 + $0x60] sm:$0xff]  ;;  %v53_v33 = vld [vmem:[%s2391_s0 + $0x68] sm:$0xff] }
   0xc   :  { %1674 = vmatpush3.msra.mxu0 %v72_v15  ;;  %v70_v34 = vld [vmem:[%s2388_s1 + $0x70] sm:$0xff]  ;;  %v71_v36 = vld [vmem:[%s2388_s1 + $0x78] sm:$0xff]  ;;  %v2033_v38 = vld [vmem:[%s2392_s5 + $0x28] sm:$0xff] }
   0xd   :  { %v54_v35 = vld [vmem:[%s2391_s0 + $0x70] sm:$0xff]  ;;  %v55_v37 = vld [vmem:[%s2391_s0 + $0x78] sm:$0xff]  ;;  %1727 = vmatprep.subr.mxu0 %v2033_v38  ;;  %1839 = vmatprep.subr.mxu1 %v2033_v38  ;;  %v677_v51 = vld [vmem:[%s2392_s5 + $0x20] sm:$0xff] }
   0xe   :  { %197 = vperm.xlu1 %1854, %v63_v7   ;;  %194 = vperm.xlu0 %1853, %v62_v8   ;;  %v676_v54 = vld [vmem:[%s2392_s5 + $0x18] sm:$0xff]  ;;  %v675_v57 = vld [vmem:[%s2392_s5 + $0x10] sm:$0xff] }
  0x12   :  { %83 = vperm.xlu1 %1854, %v41_v13   ;;  %80 = vperm.xlu0 %1853, %v40_v14  }
  0x16   :  { %89 = vperm.xlu1 %1854, %v43_v16   ;;  %86 = vperm.xlu0 %1853, %v42_v17  }
  0x1a   :  { %95 = vperm.xlu1 %1854, %v45_v18   ;;  %92 = vperm.xlu0 %1853, %v44_v19  }
  0x1e   :  { %101 = vperm.xlu1 %1854, %v47_v20   ;;  %98 = vperm.xlu0 %1853, %v46_v21  }
  0x22   :  { %200 = vperm.xlu1 %1854, %v64_v22   ;;  %104 = vperm.xlu0 %1853, %v48_v23  }
  0x26   :  { %203 = vperm.xlu1 %1854, %v65_v24   ;;  %107 = vperm.xlu0 %1853, %v49_v25  }
  0x2a   :  { %206 = vperm.xlu1 %1854, %v66_v26   ;;  %110 = vperm.xlu0 %1853, %v50_v27  }
  0x2e   :  { %209 = vperm.xlu1 %1854, %v67_v28   ;;  %113 = vperm.xlu0 %1853, %v51_v29  }
  0x32   :  { %212 = vperm.xlu1 %1854, %v68_v30   ;;  %116 = vperm.xlu0 %1853, %v52_v31  }
  0x36   :  { %215 = vperm.xlu1 %1854, %v69_v32   ;;  %119 = vperm.xlu0 %1853, %v53_v33  }
  0x3a   :  { %218 = vperm.xlu1 %1854, %v70_v34   ;;  %122 = vperm.xlu0 %1853, %v54_v35  }
  0x3e   :  { %221 = vperm.xlu1 %1854, %v71_v36   ;;  %125 = vperm.xlu0 %1853, %v55_v37  }
  0x7d   :  { %v183_v41 = vpop.permute.xlu1 %182  ;;  %v177_v42 = vpop.permute.xlu0 %176 }
  0x7e   :  { %vm223_vm3 = vcmp.eq.s32.totalorder %v177_v42, %v2037_v40  ;;  %vm225_vm4 = vcmp.eq.s32.totalorder %v183_v41, %v2037_v40 }
  0x7f   :  { %v1462_v44 = vsel %vm223_vm3, 1.0, %v1856_v43  ;;  %v1464_v48 = vsel %vm225_vm4, 1.0, %v1856_v43 }
  0x80   :  { %1703 = vmatprep.mubr.msk.f32.mxu1 %vm469_vm2, %v1462_v44 }
  0x81   :  { %v186_v45 = vpop.permute.xlu1 %185  ;;  %v180_v46 = vpop.permute.xlu0 %179 }
  0x82   :  { %vm224_vm5 = vcmp.eq.s32.totalorder %v180_v46, %v2037_v40  ;;  %vm226_vm6 = vcmp.eq.s32.totalorder %v186_v45, %v2037_v40 }
  0x83   :  { %v1463_v47 = vsel %vm224_vm5, 1.0, %v1856_v43  ;;  %v1465_v52 = vsel %vm226_vm6, 1.0, %v1856_v43 }
  0x84   :  { %1704 = vmatmul.mubr.msk.f32.vlgmr.msra.gmra.mxu1 %vm469_vm2, %v1463_v47  ;;  %v674_v47 = vld [vmem:[%s2392_s5 + $0x8] sm:$0xff] }
  0x85   :  { %v192_v49 = vpop.permute.xlu1 %191  ;;  %1706 = vmatprep.mubr.msk.f32.mxu1 %vm469_vm2, %v1464_v48  ;;  %v189_v50 = vpop.permute.xlu0 %188  ;;  %1845 = vmatpush3.msra.mxu1 %v2033_v38  ;;  %v673_v48 = vld [vmem:[%s2392_s5] sm:$0xff] }
  0x86   :  { %vm227_vm7 = vcmp.eq.s32.totalorder %v189_v50, %v2037_v40  ;;  %1840 = vmatprep.subr.mxu1 %v677_v51  ;;  %vm228_vm8 = vcmp.eq.s32.totalorder %v192_v49, %v2037_v40  ;;  %v671_v50 = vld [vmem:[%s2393_s4 + $0x20] sm:$0xff] }
  0x87   :  { %v1466_v53 = vsel %vm227_vm7, 1.0, %v1856_v43  ;;  %1846 = vmatpush3.msra.mxu1 %v677_v51  ;;  %v1467_v58 = vsel %vm228_vm8, 1.0, %v1856_v43 }
  0x88   :  { %1707 = vmatmul.mubr.msk.f32.gmra.mxu1 %vm469_vm2, %v1465_v52  ;;  %1841 = vmatprep.subr.mxu1 %v676_v54  ;;  %v670_v52 = vld [vmem:[%s2393_s4 + $0x18] sm:$0xff] }
  0x89   :  { %v198_v55 = vpop.permute.xlu1 %197  ;;  %1709 = vmatprep.mubr.msk.f32.mxu1 %vm469_vm2, %v1466_v53  ;;  %v195_v56 = vpop.permute.xlu0 %194  ;;  %1847 = vmatpush3.msra.mxu1 %v676_v54 }
  0x8a   :  { %vm229_vm9 = vcmp.eq.s32.totalorder %v195_v56, %v2037_v40  ;;  %1842 = vmatprep.subr.mxu1 %v675_v57  ;;  %vm230_vm10 = vcmp.eq.s32.totalorder %v198_v55, %v2037_v40  ;;  %v668_v56 = vld [vmem:[%s2393_s4 + $0x8] sm:$0xff] }
  0x8b   :  { %v1468_v59 = vsel %vm229_vm9, 1.0, %v1856_v43  ;;  %1848 = vmatpush3.msra.mxu1 %v675_v57  ;;  %v1469_v62 = vsel %vm230_vm10, 1.0, %v1856_v43 }
  0x8c   :  { %1710 = vmatmul.mubr.msk.f32.gmra.mxu1 %vm469_vm2, %v1467_v58  ;;  %1843 = vmatprep.subr.mxu1 %v674_v47  ;;  %v667_v58 = vld [vmem:[%s2393_s4] sm:$0xff] }
  0x8d   :  { %1712 = vmatprep.mubr.msk.f32.mxu1 %vm469_vm2, %v1468_v59  ;;  %v84_v60 = vpop.permute.xlu1 %83  ;;  %v81_v61 = vpop.permute.xlu0 %80  ;;  %1849 = vmatpush3.msra.mxu1 %v674_v47 }
  0x8e   :  { %vm128_vm12 = vcmp.eq.s32.totalorder %v84_v60, %v2037_v40  ;;  %vm127_vm13 = vcmp.eq.s32.totalorder %v81_v61, %v2037_v40  ;;  %1844 = vmatprep.subr.mxu1 %v673_v48 }
  0x8f   :  { %v1447_v63 = vsel %vm128_vm12, 1.0, %v1856_v43  ;;  %v1446_v0 = vsel %vm127_vm13, 1.0, %v1856_v43  ;;  %1850 = vmatpush3.msra.mxu1 %v673_v48 }
  0x90   :  { %1675 = vmatprep.mubr.msk.f32.mxu0 %vm271_vm11, %v1446_v0  ;;  %1713 = vmatmul.mubr.msk.f32.gmra.mxu1 %vm469_vm2, %v1469_v62 }
  0x91   :  { %v90_v1 = vpop.permute.xlu1 %89  ;;  %1676 = vmatmul.mubr.msk.f32.vlgmr.msra.gmra.mxu0 %vm271_vm11, %v1447_v63  ;;  %v87_v2 = vpop.permute.xlu0 %86 }
  0x92   :  { %vm130_vm14 = vcmp.eq.s32.totalorder %v90_v1, %v2037_v40  ;;  %vm129_vm15 = vcmp.eq.s32.totalorder %v87_v2, %v2037_v40  ;;  %1728 = vmatpush3.msra.mxu0 %v2033_v38 }
  0x93   :  { %v1449_v3 = vsel %vm130_vm14, 1.0, %v1856_v43  ;;  %v1448_v4 = vsel %vm129_vm15, 1.0, %v1856_v43  ;;  %1729 = vmatprep.subr.mxu0 %v677_v51 }
  0x94   :  { %1678 = vmatprep.mubr.msk.f32.mxu0 %vm271_vm11, %v1448_v4  ;;  %1730 = vmatpush3.msra.mxu0 %v677_v51 }
  0x95   :  { %v96_v5 = vpop.permute.xlu1 %95  ;;  %1679 = vmatmul.mubr.msk.f32.gmra.mxu0 %vm271_vm11, %v1449_v3  ;;  %v93_v6 = vpop.permute.xlu0 %92  ;;  %1731 = vmatprep.subr.mxu0 %v676_v54 }
  0x96   :  { %vm132_vm0 = vcmp.eq.s32.totalorder %v96_v5, %v2037_v40  ;;  %vm131_vm1 = vcmp.eq.s32.totalorder %v93_v6, %v2037_v40  ;;  %1732 = vmatpush3.msra.mxu0 %v676_v54  ;;  %v669_v54 = vld [vmem:[%s2393_s4 + $0x10] sm:$0xff] }
  0x97   :  { %v1451_v7 = vsel %vm132_vm0, 1.0, %v1856_v43  ;;  %v1450_v8 = vsel %vm131_vm1, 1.0, %v1856_v43  ;;  %1733 = vmatprep.subr.mxu0 %v675_v57 }
  0x98   :  { %1681 = vmatprep.mubr.msk.f32.mxu0 %vm271_vm11, %v1450_v8  ;;  %1734 = vmatpush3.msra.mxu0 %v675_v57 }
  0x99   :  { %v102_v9 = vpop.permute.xlu1 %101  ;;  %1682 = vmatmul.mubr.msk.f32.gmra.mxu0 %vm271_vm11, %v1451_v7  ;;  %v99_v10 = vpop.permute.xlu0 %98  ;;  %1735 = vmatprep.subr.mxu0 %v674_v47 }
  0x9a   :  { %vm134_vm3 = vcmp.eq.s32.totalorder %v102_v9, %v2037_v40  ;;  %vm133_vm4 = vcmp.eq.s32.totalorder %v99_v10, %v2037_v40  ;;  %1736 = vmatpush3.msra.mxu0 %v674_v47 }
  0x9b   :  { %v1453_v11 = vsel %vm134_vm3, 1.0, %v1856_v43  ;;  %v1452_v12 = vsel %vm133_vm4, 1.0, %v1856_v43  ;;  %1737 = vmatprep.subr.mxu0 %v673_v48 }
  0x9c   :  { %1684 = vmatprep.mubr.msk.f32.mxu0 %vm271_vm11, %v1452_v12  ;;  %1738 = vmatpush3.msra.mxu0 %v673_v48 }
  0x9d   :  { %v201_v13 = vpop.permute.xlu1 %200  ;;  %1685 = vmatmul.mubr.msk.f32.gmra.mxu0 %vm271_vm11, %v1453_v11  ;;  %v105_v14 = vpop.permute.xlu0 %104 }
  0x9e   :  { %vm231_vm5 = vcmp.eq.s32.totalorder %v201_v13, %v2037_v40  ;;  %vm135_vm6 = vcmp.eq.s32.totalorder %v105_v14, %v2037_v40 }
  0x9f   :  { %v1470_v15 = vsel %vm231_vm5, 1.0, %v1856_v43  ;;  %v1454_v16 = vsel %vm135_vm6, 1.0, %v1856_v43 }
  0xa0   :  { %1687 = vmatprep.mubr.msk.f32.mxu0 %vm271_vm11, %v1454_v16  ;;  %1715 = vmatprep.mubr.msk.f32.mxu1 %vm469_vm2, %v1470_v15 }
  0xa1   :  { %v204_v17 = vpop.permute.xlu1 %203  ;;  %v108_v18 = vpop.permute.xlu0 %107 }
  0xa2   :  { %vm232_vm7 = vcmp.eq.s32.totalorder %v204_v17, %v2037_v40  ;;  %vm136_vm8 = vcmp.eq.s32.totalorder %v108_v18, %v2037_v40 }
  0xa3   :  { %v1471_v19 = vsel %vm232_vm7, 1.0, %v1856_v43  ;;  %v1455_v20 = vsel %vm136_vm8, 1.0, %v1856_v43  ;;  %vm1353_vm7 = vcmask 261120   ;;  %vm1425_vm8 = vcmask 7168  }
  0xa4   :  { %1688 = vmatmul.mubr.msk.f32.gmra.mxu0 %vm271_vm11, %v1455_v20  ;;  %1716 = vmatmul.mubr.msk.f32.gmra.mxu1 %vm469_vm2, %v1471_v19 }
  0xa5   :  { %v207_v21 = vpop.permute.xlu1 %206  ;;  %v111_v22 = vpop.permute.xlu0 %110 }
  0xa6   :  { %vm233_vm9 = vcmp.eq.s32.totalorder %v207_v21, %v2037_v40  ;;  %vm137_vm10 = vcmp.eq.s32.totalorder %v111_v22, %v2037_v40  ;;  %v1112_v21 = vld [vmem:[%s2394_s7 + $0x38] sm:$0xff]  ;;  %v1111_v22 = vld [vmem:[%s2394_s7 + $0x30] sm:$0xff] }
  0xa7   :  { %v1472_v23 = vsel %vm233_vm9, 1.0, %v1856_v43  ;;  %v1456_v24 = vsel %vm137_vm10, 1.0, %v1856_v43  ;;  %1799 = vmatprep.subr.mxu1 %v1112_v21 }
  0xa8   :  { %1690 = vmatprep.mubr.msk.f32.mxu0 %vm271_vm11, %v1456_v24  ;;  %1718 = vmatprep.mubr.msk.f32.mxu1 %vm469_vm2, %v1472_v23  ;;  %v1110_v23 = vld [vmem:[%s2394_s7 + $0x28] sm:$0xff]  ;;  %v1109_v24 = vld [vmem:[%s2394_s7 + $0x20] sm:$0xff] }
  0xa9   :  { %v210_v25 = vpop.permute.xlu1 %209  ;;  %v114_v26 = vpop.permute.xlu0 %113 }
  0xaa   :  { %vm234_vm12 = vcmp.eq.s32.totalorder %v210_v25, %v2037_v40  ;;  %vm138_vm13 = vcmp.eq.s32.totalorder %v114_v26, %v2037_v40  ;;  %v1108_v25 = vld [vmem:[%s2394_s7 + $0x18] sm:$0xff]  ;;  %v1107_v26 = vld [vmem:[%s2394_s7 + $0x10] sm:$0xff] }
  0xab   :  { %v1473_v27 = vsel %vm234_vm12, 1.0, %v1856_v43  ;;  %v1457_v28 = vsel %vm138_vm13, 1.0, %v1856_v43 }
  0xac   :  { %1691 = vmatmul.mubr.msk.f32.gmra.mxu0 %vm271_vm11, %v1457_v28  ;;  %1719 = vmatmul.mubr.msk.f32.gmra.mxu1 %vm469_vm2, %v1473_v27  ;;  %v1106_v27 = vld [vmem:[%s2394_s7 + $0x8] sm:$0xff]  ;;  %v1105_v28 = vld [vmem:[%s2394_s7] sm:$0xff] }
  0xad   :  { %v213_v29 = vpop.permute.xlu1 %212  ;;  %v117_v30 = vpop.permute.xlu0 %116 }
  0xae   :  { %vm235_vm14 = vcmp.eq.s32.totalorder %v213_v29, %v2037_v40  ;;  %vm139_vm15 = vcmp.eq.s32.totalorder %v117_v30, %v2037_v40 }
  0xaf   :  { %v1474_v31 = vsel %vm235_vm14, 1.0, %v1856_v43  ;;  %v1458_v32 = vsel %vm139_vm15, 1.0, %v1856_v43 }
  0xb0   :  { %1693 = vmatprep.mubr.msk.f32.mxu0 %vm271_vm11, %v1458_v32  ;;  %1721 = vmatprep.mubr.msk.f32.mxu1 %vm469_vm2, %v1474_v31 }
  0xb1   :  { %v216_v33 = vpop.permute.xlu1 %215  ;;  %v120_v34 = vpop.permute.xlu0 %119 }
  0xb2   :  { %vm236_vm0 = vcmp.eq.s32.totalorder %v216_v33, %v2037_v40  ;;  %vm140_vm1 = vcmp.eq.s32.totalorder %v120_v34, %v2037_v40 }
  0xb3   :  { %v1475_v35 = vsel %vm236_vm0, 1.0, %v1856_v43  ;;  %v1459_v36 = vsel %vm140_vm1, 1.0, %v1856_v43 }
  0xb4   :  { %1694 = vmatmul.mubr.msk.f32.gmra.mxu0 %vm271_vm11, %v1459_v36  ;;  %1722 = vmatmul.mubr.msk.f32.gmra.mxu1 %vm469_vm2, %v1475_v35 }
  0xb5   :  { %v219_v37 = vpop.permute.xlu1 %218  ;;  %v123_v38 = vpop.permute.xlu0 %122 }
  0xb6   :  { %vm237_vm3 = vcmp.eq.s32.totalorder %v219_v37, %v2037_v40  ;;  %vm141_vm4 = vcmp.eq.s32.totalorder %v123_v38, %v2037_v40 }
  0xb7   :  { %v1476_v39 = vsel %vm237_vm3, 1.0, %v1856_v43  ;;  %v1460_v41 = vsel %vm141_vm4, 1.0, %v1856_v43 }
  0xb8   :  { %1696 = vmatprep.mubr.msk.f32.mxu0 %vm271_vm11, %v1460_v41  ;;  %1724 = vmatprep.mubr.msk.f32.mxu1 %vm469_vm2, %v1476_v39  ;;  %v2229_v39 = vld [vmem:[%s2395_s6] ss:$0 sm:$0xff] }
  0xb9   :  { %v222_v42 = vpop.permute.xlu1 %221  ;;  %v126_v44 = vpop.permute.xlu0 %125 }
  0xba   :  { %vm238_vm5 = vcmp.eq.s32.totalorder %v222_v42, %v2037_v40  ;;  %vm142_vm6 = vcmp.eq.s32.totalorder %v126_v44, %v2037_v40  ;;  %v672_v40 = vld [vmem:[%s2393_s4 + $0x28] sm:$0xff] }
  0xbb   :  { %v1477_v45 = vsel %vm238_vm5, 1.0, %v1856_v43  ;;  %v1461_v46 = vsel %vm142_vm6, 1.0, %v1856_v43  ;;  %1763 = vmatprep.subr.mxu0 %v672_v40 }
  0xbc   :  { %1697 = vmatmul.mubr.msk.f32.gmra.mxu0 %vm271_vm11, %v1461_v46  ;;  %1725 = vmatmul.mubr.msk.f32.gmra.mxu1 %vm469_vm2, %v1477_v45  ;;  %vm679_vm2 = vcmask 392192   ;;  %vm1120_vm11 = vcmask 523264  }
 0x144   :  { %v1705_v43 = vpop.f32.mrf.mxu1 }
 0x146   :  { %v588_v49 = vpop.f32.mrf.mxu1 }
 0x147   :  { %1739 = vmatprep.mubr.msk.f32.mxu0 %vm679_vm2, %v588_v49 }
 0x148   :  { %v1708_v51 = vpop.f32.mrf.mxu1  ;;  %1740 = vmatmul.mubr.msk.f32.vlgmr.msra.gmra.mxu0 %vm679_vm2, %v1705_v43 }
 0x149   :  { %1764 = vmatpush3.msra.mxu0 %v672_v40 }
 0x14a   :  { %v598_v53 = vpop.f32.mrf.mxu1  ;;  %1765 = vmatprep.subr.mxu0 %v671_v50 }
 0x14b   :  { %1742 = vmatprep.mubr.msk.f32.mxu0 %vm679_vm2, %v598_v53  ;;  %1766 = vmatpush3.msra.mxu0 %v671_v50 }
 0x14c   :  { %v1711_v55 = vpop.f32.mrf.mxu1  ;;  %1743 = vmatmul.mubr.msk.f32.gmra.mxu0 %vm679_vm2, %v1708_v51  ;;  %1767 = vmatprep.subr.mxu0 %v670_v52 }
 0x14d   :  { %1768 = vmatpush3.msra.mxu0 %v670_v52 }
 0x14e   :  { %v608_v57 = vpop.f32.mrf.mxu1  ;;  %1769 = vmatprep.subr.mxu0 %v669_v54 }
 0x14f   :  { %1745 = vmatprep.mubr.msk.f32.mxu0 %vm679_vm2, %v608_v57  ;;  %1770 = vmatpush3.msra.mxu0 %v669_v54 }
 0x150   :  { %v1714_v59 = vpop.f32.mrf.mxu1  ;;  %1746 = vmatmul.mubr.msk.f32.gmra.mxu0 %vm679_vm2, %v1711_v55  ;;  %1771 = vmatprep.subr.mxu0 %v668_v56 }
 0x151   :  { %v1677_v60 = vpop.f32.mrf.mxu0  ;;  %1772 = vmatpush3.msra.mxu0 %v668_v56 }
 0x152   :  { %v618_v61 = vpop.f32.mrf.mxu1  ;;  %1773 = vmatprep.subr.mxu0 %v667_v58 }
 0x153   :  { %v390_v62 = vpop.f32.mrf.mxu0  ;;  %1748 = vmatprep.mubr.msk.f32.mxu0 %vm679_vm2, %v618_v61  ;;  %1774 = vmatpush3.msra.mxu0 %v667_v58 }
 0x154   :  { %1749 = vmatmul.mubr.msk.f32.gmra.mxu0 %vm679_vm2, %v1714_v59 }
 0x155   :  { %v1680_v63 = vpop.f32.mrf.mxu0  ;;  %1775 = vmatprep.mubr.msk.f32.mxu0 %vm679_vm2, %v390_v62 }
 0x157   :  { %v400_v0 = vpop.f32.mrf.mxu0 }
 0x158   :  { %1776 = vmatmul.mubr.msk.f32.vlgmr.msra.gmra.mxu0 %vm679_vm2, %v1677_v60 }
 0x159   :  { %v1683_v1 = vpop.f32.mrf.mxu0  ;;  %1778 = vmatprep.mubr.msk.f32.mxu0 %vm679_vm2, %v400_v0 }
 0x15b   :  { %v410_v2 = vpop.f32.mrf.mxu0 }
 0x15c   :  { %1779 = vmatmul.mubr.msk.f32.gmra.mxu0 %vm679_vm2, %v1680_v63 }
 0x15d   :  { %v1686_v3 = vpop.f32.mrf.mxu0  ;;  %1781 = vmatprep.mubr.msk.f32.mxu0 %vm679_vm2, %v410_v2 }
 0x15f   :  { %v420_v4 = vpop.f32.mrf.mxu0 }
 0x160   :  { %1782 = vmatmul.mubr.msk.f32.gmra.mxu0 %vm679_vm2, %v1683_v1 }
 0x161   :  { %1784 = vmatprep.mubr.msk.f32.mxu0 %vm679_vm2, %v420_v4 }
 0x164   :  { %v1689_v5 = vpop.f32.mrf.mxu0  ;;  %v1717_v6 = vpop.f32.mrf.mxu1  ;;  %1785 = vmatmul.mubr.msk.f32.gmra.mxu0 %vm679_vm2, %v1686_v3 }
 0x166   :  { %v430_v7 = vpop.f32.mrf.mxu0  ;;  %v628_v8 = vpop.f32.mrf.mxu1 }
 0x167   :  { %1751 = vmatprep.mubr.msk.f32.mxu1 %vm679_vm2, %v628_v8  ;;  %1787 = vmatprep.mubr.msk.f32.mxu0 %vm679_vm2, %v430_v7 }
 0x168   :  { %1752 = vmatmul.mubr.msk.f32.vlgmr.msra.gmra.mxu1 %vm679_vm2, %v1717_v6  ;;  %1788 = vmatmul.mubr.msk.f32.gmra.mxu0 %vm679_vm2, %v1689_v5 }
 0x169   :  { %1800 = vmatpush3.msra.mxu1 %v1112_v21 }
 0x16a   :  { %1801 = vmatprep.subr.mxu1 %v1111_v22 }
 0x16b   :  { %1802 = vmatpush3.msra.mxu1 %v1111_v22 }
 0x16c   :  { %v1692_v9 = vpop.f32.mrf.mxu0  ;;  %v1720_v10 = vpop.f32.mrf.mxu1  ;;  %1803 = vmatprep.subr.mxu1 %v1110_v23 }
 0x16d   :  { %1804 = vmatpush3.msra.mxu1 %v1110_v23 }
 0x16e   :  { %v440_v11 = vpop.f32.mrf.mxu0  ;;  %v638_v12 = vpop.f32.mrf.mxu1  ;;  %1805 = vmatprep.subr.mxu1 %v1109_v24 }
 0x16f   :  { %1754 = vmatprep.mubr.msk.f32.mxu1 %vm679_vm2, %v638_v12  ;;  %1790 = vmatprep.mubr.msk.f32.mxu0 %vm679_vm2, %v440_v11 }
 0x170   :  { %1755 = vmatmul.mubr.msk.f32.gmra.mxu1 %vm679_vm2, %v1720_v10  ;;  %1791 = vmatmul.mubr.msk.f32.gmra.mxu0 %vm679_vm2, %v1692_v9 }
 0x171   :  { %1806 = vmatpush3.msra.mxu1 %v1109_v24 }
 0x172   :  { %1807 = vmatprep.subr.mxu1 %v1108_v25 }
 0x173   :  { %1808 = vmatpush3.msra.mxu1 %v1108_v25 }
 0x174   :  { %v1695_v13 = vpop.f32.mrf.mxu0  ;;  %v1723_v14 = vpop.f32.mrf.mxu1  ;;  %1809 = vmatprep.subr.mxu1 %v1107_v26 }
 0x175   :  { %1810 = vmatpush3.msra.mxu1 %v1107_v26 }
 0x176   :  { %v450_v15 = vpop.f32.mrf.mxu0  ;;  %v648_v16 = vpop.f32.mrf.mxu1  ;;  %1811 = vmatprep.subr.mxu1 %v1106_v27 }
 0x177   :  { %1757 = vmatprep.mubr.msk.f32.mxu1 %vm679_vm2, %v648_v16  ;;  %1793 = vmatprep.mubr.msk.f32.mxu0 %vm679_vm2, %v450_v15 }
 0x178   :  { %1758 = vmatmul.mubr.msk.f32.gmra.mxu1 %vm679_vm2, %v1723_v14  ;;  %1794 = vmatmul.mubr.msk.f32.gmra.mxu0 %vm679_vm2, %v1695_v13 }
 0x179   :  { %1812 = vmatpush3.msra.mxu1 %v1106_v27 }
 0x17a   :  { %1813 = vmatprep.subr.mxu1 %v1105_v28 }
 0x17b   :  { %1814 = vmatpush3.msra.mxu1 %v1105_v28 }
 0x17c   :  { %v1698_v17 = vpop.f32.mrf.mxu0  ;;  %v1726_v18 = vpop.f32.mrf.mxu1 }
 0x17e   :  { %v460_v19 = vpop.f32.mrf.mxu0  ;;  %v658_v20 = vpop.f32.mrf.mxu1 }
 0x17f   :  { %1760 = vmatprep.mubr.msk.f32.mxu1 %vm679_vm2, %v658_v20  ;;  %1796 = vmatprep.mubr.msk.f32.mxu0 %vm679_vm2, %v460_v19 }
 0x180   :  { %1761 = vmatmul.mubr.msk.f32.gmra.mxu1 %vm679_vm2, %v1726_v18  ;;  %1797 = vmatmul.mubr.msk.f32.gmra.mxu0 %vm679_vm2, %v1698_v17 }
 0x208   :  { %v1741_v29 = vpop.f32.mrf.mxu0 }
 0x20a   :  { %v794_v30 = vpop.f32.mrf.mxu0 }
 0x20c   :  { %v1744_v31 = vpop.f32.mrf.mxu0 }
 0x20e   :  { %v804_v32 = vpop.f32.mrf.mxu0 }
 0x210   :  { %v1747_v33 = vpop.f32.mrf.mxu0 }
 0x212   :  { %v814_v34 = vpop.f32.mrf.mxu0 }
 0x214   :  { %v1750_v35 = vpop.f32.mrf.mxu0 }
 0x216   :  { %v824_v36 = vpop.f32.mrf.mxu0 }
 0x218   :  { %v1777_v37 = vpop.f32.mrf.mxu0 }
 0x219   :  { %v993_v38 = vadd.f32 %v1777_v37, %v1741_v29 }
 0x21a   :  { %v987_v41 = vpop.f32.mrf.mxu0 }
 0x21b   :  { %v988_v42 = vadd.f32 %v987_v41, %v794_v30  ;;  %v1074_v44 = vadd.f32 %v2229_v39, %v993_v38 }
 0x21c   :  { %v1780_v45 = vpop.f32.mrf.mxu0 }
 0x21d   :  { %v1073_v46 = vadd.f32 %v2229_v39, %v988_v42  ;;  %v1003_v47 = vadd.f32 %v1780_v45, %v1744_v31  ;;  %v1090_v49 = vmax.f32 %v1074_v44, 0.0 }
 0x21e   :  { %v997_v48 = vpop.f32.mrf.mxu0 }
 0x21f   :  { %v1089_v40 = vmax.f32 %v1073_v46, 0.0  ;;  %v998_v43 = vadd.f32 %v997_v48, %v804_v32  ;;  %v1076_v50 = vadd.f32 %v2229_v39, %v1003_v47 }
 0x220   :  { %v1783_v51 = vpop.f32.mrf.mxu0 }
 0x221   :  { %v1075_v52 = vadd.f32 %v2229_v39, %v998_v43  ;;  %v1013_v53 = vadd.f32 %v1783_v51, %v1747_v33  ;;  %1815 = vmatprep.mubr.msk.f32.mxu1 %vm1120_vm11, %v1089_v40  ;;  %v1092_v57 = vmax.f32 %v1076_v50, 0.0  ;;  %v16_v40 = vstv %s2396_s10  ;;  %v2269_v43 = vld [vmem:[%s2397_s8] ss:$0 sm:$0xff] }
 0x222   :  { %v1007_v54 = vpop.f32.mrf.mxu0  ;;  %1816 = vmatmul.mubr.msk.f32.vlgmr.msra.gmra.mxu1 %vm1120_vm11, %v1090_v49  ;;  %17 = vst [vmem:[#allocation2] sm:$0x1] %v16_v40  ;;  %v2275_v51 = vld [vmem:[%s2398_s9] ss:$0 sm:$0xff] }
 0x223   :  { %v1091_v55 = vmax.f32 %v1075_v52, 0.0  ;;  %v1008_v56 = vadd.f32 %v1007_v54, %v814_v34  ;;  %v1078_v58 = vadd.f32 %v2229_v39, %v1013_v53 }
 0x224   :  { %v1786_v59 = vpop.f32.mrf.mxu0 }
 0x225   :  { %v1077_v60 = vadd.f32 %v2229_v39, %v1008_v56  ;;  %v1023_v61 = vadd.f32 %v1786_v59, %v1750_v35  ;;  %1818 = vmatprep.mubr.msk.f32.mxu1 %vm1120_vm11, %v1091_v55  ;;  %v1094_v1 = vmax.f32 %v1078_v58, 0.0 }
 0x226   :  { %v1017_v62 = vpop.f32.mrf.mxu0  ;;  %1819 = vmatmul.mubr.msk.f32.gmra.mxu1 %vm1120_vm11, %v1092_v57 }
 0x227   :  { %v1093_v63 = vmax.f32 %v1077_v60, 0.0  ;;  %v1018_v0 = vadd.f32 %v1017_v62, %v824_v36  ;;  %v1080_v2 = vadd.f32 %v2229_v39, %v1023_v61 }
 0x228   :  { %v1753_v3 = vpop.f32.mrf.mxu1  ;;  %v1789_v4 = vpop.f32.mrf.mxu0 }
 0x229   :  { %v1079_v5 = vadd.f32 %v2229_v39, %v1018_v0  ;;  %v1033_v6 = vadd.f32 %v1789_v4, %v1753_v3  ;;  %1821 = vmatprep.mubr.msk.f32.mxu1 %vm1120_vm11, %v1093_v63  ;;  %v1096_v11 = vmax.f32 %v1080_v2, 0.0 }
 0x22a   :  { %v834_v7 = vpop.f32.mrf.mxu1  ;;  %v1027_v8 = vpop.f32.mrf.mxu0  ;;  %1822 = vmatmul.mubr.msk.f32.gmra.mxu1 %vm1120_vm11, %v1094_v1 }
 0x22b   :  { %v1095_v9 = vmax.f32 %v1079_v5, 0.0  ;;  %v1028_v10 = vadd.f32 %v1027_v8, %v834_v7  ;;  %v1082_v12 = vadd.f32 %v2229_v39, %v1033_v6 }
 0x22d   :  { %v1081_v13 = vadd.f32 %v2229_v39, %v1028_v10  ;;  %1824 = vmatprep.mubr.msk.f32.mxu1 %vm1120_vm11, %v1095_v9  ;;  %v1098_v15 = vmax.f32 %v1082_v12, 0.0 }
 0x22e   :  { %1825 = vmatmul.mubr.msk.f32.gmra.mxu1 %vm1120_vm11, %v1096_v11 }
 0x22f   :  { %v1097_v14 = vmax.f32 %v1081_v13, 0.0 }
 0x230   :  { %v1756_v16 = vpop.f32.mrf.mxu1  ;;  %v1792_v17 = vpop.f32.mrf.mxu0 }
 0x231   :  { %v1043_v18 = vadd.f32 %v1792_v17, %v1756_v16  ;;  %1827 = vmatprep.mubr.msk.f32.mxu1 %vm1120_vm11, %v1097_v14 }
 0x232   :  { %v844_v19 = vpop.f32.mrf.mxu1  ;;  %v1037_v20 = vpop.f32.mrf.mxu0  ;;  %1828 = vmatmul.mubr.msk.f32.gmra.mxu1 %vm1120_vm11, %v1098_v15 }
 0x233   :  { %v1038_v21 = vadd.f32 %v1037_v20, %v844_v19  ;;  %v1084_v22 = vadd.f32 %v2229_v39, %v1043_v18 }
 0x235   :  { %v1083_v23 = vadd.f32 %v2229_v39, %v1038_v21  ;;  %v1100_v25 = vmax.f32 %v1084_v22, 0.0 }
 0x237   :  { %v1099_v24 = vmax.f32 %v1083_v23, 0.0 }
 0x238   :  { %v1759_v26 = vpop.f32.mrf.mxu1  ;;  %v1795_v27 = vpop.f32.mrf.mxu0 }
 0x239   :  { %v1053_v28 = vadd.f32 %v1795_v27, %v1759_v26  ;;  %1830 = vmatprep.mubr.msk.f32.mxu1 %vm1120_vm11, %v1099_v24 }
 0x23a   :  { %v854_v29 = vpop.f32.mrf.mxu1  ;;  %v1047_v30 = vpop.f32.mrf.mxu0  ;;  %1831 = vmatmul.mubr.msk.f32.gmra.mxu1 %vm1120_vm11, %v1100_v25 }
 0x23b   :  { %v1048_v31 = vadd.f32 %v1047_v30, %v854_v29  ;;  %v1086_v32 = vadd.f32 %v2229_v39, %v1053_v28 }
 0x23d   :  { %v1085_v33 = vadd.f32 %v2229_v39, %v1048_v31  ;;  %v1102_v35 = vmax.f32 %v1086_v32, 0.0 }
 0x23f   :  { %v1101_v34 = vmax.f32 %v1085_v33, 0.0 }
 0x240   :  { %v1762_v36 = vpop.f32.mrf.mxu1  ;;  %v1798_v37 = vpop.f32.mrf.mxu0 }
 0x241   :  { %v1063_v38 = vadd.f32 %v1798_v37, %v1762_v36  ;;  %1833 = vmatprep.mubr.msk.f32.mxu1 %vm1120_vm11, %v1101_v34 }
 0x242   :  { %v864_v41 = vpop.f32.mrf.mxu1  ;;  %v1057_v42 = vpop.f32.mrf.mxu0  ;;  %1834 = vmatmul.mubr.msk.f32.gmra.mxu1 %vm1120_vm11, %v1102_v35 }
 0x243   :  { %v1058_v44 = vadd.f32 %v1057_v42, %v864_v41  ;;  %v1088_v45 = vadd.f32 %v2229_v39, %v1063_v38 }
 0x245   :  { %v1087_v46 = vadd.f32 %v2229_v39, %v1058_v44  ;;  %v1104_v48 = vmax.f32 %v1088_v45, 0.0 }
 0x247   :  { %v1103_v47 = vmax.f32 %v1087_v46, 0.0 }
 0x249   :  { %1836 = vmatprep.mubr.msk.f32.mxu1 %vm1120_vm11, %v1103_v47 }
 0x24a   :  { %1837 = vmatmul.mubr.msk.f32.gmra.mxu1 %vm1120_vm11, %v1104_v48 }
 0x2e2   :  { %v1817_v49 = vpop.f32.mrf.mxu1 }
 0x2e3   :  { %v1241_v50 = vadd.f32 %v1817_v49, %v2269_v43 }
 0x2e4   :  { %v1235_v39 = vpop.f32.mrf.mxu1 }
 0x2e5   :  { %v1315_v52 = vmax.f32 %v1241_v50, 0.0  ;;  %v1236_v53 = vadd.f32 %v2269_v43, %v1235_v39 }
 0x2e6   :  { %v1820_v54 = vpop.f32.mrf.mxu1 }
 0x2e7   :  { %v1314_v55 = vmax.f32 %v1236_v53, 0.0  ;;  %v1251_v56 = vadd.f32 %v1820_v54, %v2269_v43  ;;  %v1338_v57 = vmul.f32 %v2275_v51, %v1315_v52 }
 0x2e8   :  { %v1245_v58 = vpop.f32.mrf.mxu1 }
 0x2e9   :  { %v1317_v59 = vmax.f32 %v1251_v56, 0.0  ;;  %v1246_v60 = vadd.f32 %v2269_v43, %v1245_v58  ;;  %v1357_v61 = vsel %vm1353_vm7, %v1338_v57, 0.0  ;;  %v1337_v62 = vmul.f32 %v2275_v51, %v1314_v55 }
 0x2ea   :  { %1358 = vadd.xlane.f32.xlu1 %v1357_v61  ;;  %v1823_v63 = vpop.f32.mrf.mxu1 }
 0x2eb   :  { %v1316_v0 = vmax.f32 %v1246_v60, 0.0  ;;  %v1261_v1 = vadd.f32 %v1823_v63, %v2269_v43  ;;  %v1354_v2 = vsel %vm1353_vm7, %v1337_v62, 0.0  ;;  %v1340_v3 = vmul.f32 %v2275_v51, %v1317_v59 }
 0x2ec   :  { %v1255_v4 = vpop.f32.mrf.mxu1  ;;  %1355 = vadd.xlane.f32.xlu0 %v1354_v2 }
 0x2ed   :  { %v1256_v5 = vadd.f32 %v2269_v43, %v1255_v4  ;;  %v1319_v6 = vmax.f32 %v1261_v1, 0.0  ;;  %v1339_v8 = vmul.f32 %v2275_v51, %v1316_v0  ;;  %v1363_v11 = vsel %vm1353_vm7, %v1340_v3, 0.0  ;;  %v1563_v3 = vld [vmem:[#allocation2] ss:$0 sm:$0xff] }
 0x2ee   :  { %v1826_v7 = vpop.f32.mrf.mxu1 }
 0x2ef   :  { %v1318_v9 = vmax.f32 %v1256_v5, 0.0  ;;  %v1271_v10 = vadd.f32 %v1826_v7, %v2269_v43  ;;  %v1360_v16 = vsel %vm1353_vm7, %v1339_v8, 0.0  ;;  %v1342_v17 = vmul.f32 %v2275_v51, %v1319_v6 }
 0x2f0   :  { %v1265_v12 = vpop.f32.mrf.mxu1  ;;  %1364 = vadd.xlane.f32.xlu0 %v1363_v11 }
 0x2f1   :  { %v1266_v13 = vadd.f32 %v2269_v43, %v1265_v12  ;;  %v1341_v14 = vmul.f32 %v2275_v51, %v1318_v9  ;;  %v1321_v18 = vmax.f32 %v1271_v10, 0.0  ;;  %v1369_v25 = vsel %vm1353_vm7, %v1342_v17, 0.0 }
 0x2f2   :  { %v1829_v15 = vpop.f32.mrf.mxu1 }
 0x2f3   :  { %v1320_v19 = vmax.f32 %v1266_v13, 0.0  ;;  %v1281_v20 = vadd.f32 %v1829_v15, %v2269_v43  ;;  %v1366_v21 = vsel %vm1353_vm7, %v1341_v14, 0.0  ;;  %v1344_v29 = vmul.f32 %v2275_v51, %v1321_v18 }
 0x2f4   :  { %v1275_v22 = vpop.f32.mrf.mxu1  ;;  %1367 = vadd.xlane.f32.xlu1 %v1366_v21  ;;  %1361 = vadd.xlane.f32.xlu0 %v1360_v16 }
 0x2f5   :  { %v1276_v23 = vadd.f32 %v2269_v43, %v1275_v22  ;;  %v1343_v24 = vmul.f32 %v2275_v51, %v1320_v19  ;;  %v1323_v26 = vmax.f32 %v1281_v20, 0.0  ;;  %v1375_v34 = vsel %vm1353_vm7, %v1344_v29, 0.0 }
 0x2f7   :  { %v1322_v27 = vmax.f32 %v1276_v23, 0.0  ;;  %v1372_v28 = vsel %vm1353_vm7, %v1343_v24, 0.0  ;;  %v1346_v35 = vmul.f32 %v2275_v51, %v1323_v26 }
 0x2f8   :  { %1373 = vadd.xlane.f32.xlu1 %v1372_v28  ;;  %1370 = vadd.xlane.f32.xlu0 %v1369_v25 }
 0x2f9   :  { %v1345_v30 = vmul.f32 %v2275_v51, %v1322_v27  ;;  %v1381_v42 = vsel %vm1353_vm7, %v1346_v35, 0.0 }
 0x2fa   :  { %v1832_v31 = vpop.f32.mrf.mxu1 }
 0x2fb   :  { %v1291_v32 = vadd.f32 %v1832_v31, %v2269_v43  ;;  %v1378_v33 = vsel %vm1353_vm7, %v1345_v30, 0.0 }
 0x2fc   :  { %v1285_v36 = vpop.f32.mrf.mxu1  ;;  %1379 = vadd.xlane.f32.xlu1 %v1378_v33  ;;  %1376 = vadd.xlane.f32.xlu0 %v1375_v34 }
 0x2fd   :  { %v1325_v37 = vmax.f32 %v1291_v32, 0.0  ;;  %v1286_v38 = vadd.f32 %v2269_v43, %v1285_v36 }
 0x2ff   :  { %v1324_v41 = vmax.f32 %v1286_v38, 0.0  ;;  %v1348_v44 = vmul.f32 %v2275_v51, %v1325_v37 }
 0x300   :  { %1382 = vadd.xlane.f32.xlu0 %v1381_v42 }
 0x301   :  { %v1347_v45 = vmul.f32 %v2275_v51, %v1324_v41  ;;  %v1387_v40 = vsel %vm1353_vm7, %v1348_v44, 0.0 }
 0x302   :  { %v1835_v46 = vpop.f32.mrf.mxu1 }
 0x303   :  { %v1301_v47 = vadd.f32 %v1835_v46, %v2269_v43  ;;  %v1384_v48 = vsel %vm1353_vm7, %v1347_v45, 0.0 }
 0x304   :  { %v1295_v49 = vpop.f32.mrf.mxu1  ;;  %1385 = vadd.xlane.f32.xlu1 %v1384_v48  ;;  %1388 = vadd.xlane.f32.xlu0 %v1387_v40 }
 0x305   :  { %v1327_v50 = vmax.f32 %v1301_v47, 0.0  ;;  %v1296_v39 = vadd.f32 %v2269_v43, %v1295_v49 }
 0x307   :  { %v1326_v52 = vmax.f32 %v1296_v39, 0.0  ;;  %v1350_v53 = vmul.f32 %v2275_v51, %v1327_v50 }
 0x309   :  { %v1393_v54 = vsel %vm1353_vm7, %v1350_v53, 0.0  ;;  %v1349_v55 = vmul.f32 %v2275_v51, %v1326_v52 }
 0x30a   :  { %v1838_v56 = vpop.f32.mrf.mxu1  ;;  %1394 = vadd.xlane.f32.xlu0 %v1393_v54 }
 0x30b   :  { %v1311_v57 = vadd.f32 %v1838_v56, %v2269_v43  ;;  %v1390_v58 = vsel %vm1353_vm7, %v1349_v55, 0.0 }
 0x30c   :  { %v1305_v59 = vpop.f32.mrf.mxu1  ;;  %1391 = vadd.xlane.f32.xlu1 %v1390_v58 }
 0x30d   :  { %v1329_v60 = vmax.f32 %v1311_v57, 0.0  ;;  %v1306_v61 = vadd.f32 %v2269_v43, %v1305_v59 }
 0x30f   :  { %v1328_v62 = vmax.f32 %v1306_v61, 0.0  ;;  %v1352_v63 = vmul.f32 %v2275_v51, %v1329_v60 }
 0x311   :  { %v1399_v0 = vsel %vm1353_vm7, %v1352_v63, 0.0  ;;  %v1351_v1 = vmul.f32 %v2275_v51, %v1328_v62 }
 0x312   :  { %1400 = vadd.xlane.f32.xlu0 %v1399_v0 }
 0x313   :  { %v1396_v2 = vsel %vm1353_vm7, %v1351_v1, 0.0 }
 0x314   :  { %1397 = vadd.xlane.f32.xlu1 %v1396_v2 }
 0x373   :  { %v1359_v4 = vpop.xlane.xlu1 %1358 }
 0x374   :  { %v1410_v5 = vadd.f32 %v1563_v3, %v1359_v4 }
 0x375   :  { %v1356_v6 = vpop.xlane.xlu0 %1355 }
 0x376   :  { %1427 = vst.msk [vmem:[%s2399_s11 + $0x8] sm:$0xff] %vm1425_vm8, %v1410_v5  ;;  %v1409_v43 = vadd.f32 %v1563_v3, %v1356_v6 }
 0x378   :  { %1426 = vst.msk [vmem:[%s2399_s11] sm:$0xff] %vm1425_vm8, %v1409_v43 }
 0x379   :  { %v1365_v51 = vpop.xlane.xlu0 %1364 }
 0x37a   :  { %v1412_v7 = vadd.f32 %v1563_v3, %v1365_v51 }
 0x37c   :  { %1429 = vst.msk [vmem:[%s2399_s11 + $0x18] sm:$0xff] %vm1425_vm8, %v1412_v7 }
 0x37d   :  { %v1368_v8 = vpop.xlane.xlu1 %1367  ;;  %v1362_v9 = vpop.xlane.xlu0 %1361 }
 0x37e   :  { %v1413_v10 = vadd.f32 %v1563_v3, %v1368_v8  ;;  %v1411_v11 = vadd.f32 %v1563_v3, %v1362_v9 }
 0x380   :  { %1430 = vst.msk [vmem:[%s2399_s11 + $0x20] sm:$0xff] %vm1425_vm8, %v1413_v10  ;;  %1428 = vst.msk [vmem:[%s2399_s11 + $0x10] sm:$0xff] %vm1425_vm8, %v1411_v11 }
 0x381   :  { %v1374_v12 = vpop.xlane.xlu1 %1373  ;;  %v1371_v13 = vpop.xlane.xlu0 %1370 }
 0x382   :  { %v1415_v14 = vadd.f32 %v1563_v3, %v1374_v12  ;;  %v1414_v15 = vadd.f32 %v1563_v3, %v1371_v13 }
 0x384   :  { %1432 = vst.msk [vmem:[%s2399_s11 + $0x30] sm:$0xff] %vm1425_vm8, %v1415_v14  ;;  %1431 = vst.msk [vmem:[%s2399_s11 + $0x28] sm:$0xff] %vm1425_vm8, %v1414_v15 }
 0x385   :  { %v1380_v16 = vpop.xlane.xlu1 %1379  ;;  %v1377_v17 = vpop.xlane.xlu0 %1376 }
 0x386   :  { %v1417_v18 = vadd.f32 %v1563_v3, %v1380_v16  ;;  %v1416_v19 = vadd.f32 %v1563_v3, %v1377_v17 }
 0x388   :  { %1434 = vst.msk [vmem:[%s2399_s11 + $0x40] sm:$0xff] %vm1425_vm8, %v1417_v18  ;;  %1433 = vst.msk [vmem:[%s2399_s11 + $0x38] sm:$0xff] %vm1425_vm8, %v1416_v19 }
 0x389   :  { %v1383_v20 = vpop.xlane.xlu0 %1382 }
 0x38a   :  { %v1418_v21 = vadd.f32 %v1563_v3, %v1383_v20 }
 0x38c   :  { %1435 = vst.msk [vmem:[%s2399_s11 + $0x48] sm:$0xff] %vm1425_vm8, %v1418_v21 }
 0x38d   :  { %v1386_v22 = vpop.xlane.xlu1 %1385  ;;  %v1389_v23 = vpop.xlane.xlu0 %1388 }
 0x38e   :  { %v1419_v24 = vadd.f32 %v1563_v3, %v1386_v22  ;;  %v1420_v25 = vadd.f32 %v1563_v3, %v1389_v23 }
 0x390   :  { %1436 = vst.msk [vmem:[%s2399_s11 + $0x50] sm:$0xff] %vm1425_vm8, %v1419_v24  ;;  %1437 = vst.msk [vmem:[%s2399_s11 + $0x58] sm:$0xff] %vm1425_vm8, %v1420_v25 }
 0x393   :  { %v1395_v26 = vpop.xlane.xlu0 %1394 }
 0x394   :  { %v1422_v27 = vadd.f32 %v1563_v3, %v1395_v26 }
 0x395   :  { %v1392_v28 = vpop.xlane.xlu1 %1391 }
 0x396   :  { %1439 = vst.msk [vmem:[%s2399_s11 + $0x68] sm:$0xff] %vm1425_vm8, %v1422_v27  ;;  %v1421_v29 = vadd.f32 %v1563_v3, %v1392_v28 }
 0x398   :  { %1438 = vst.msk [vmem:[%s2399_s11 + $0x60] sm:$0xff] %vm1425_vm8, %v1421_v29 }
 0x39b   :  { %v1401_v30 = vpop.xlane.xlu0 %1400 }
 0x39c   :  { %v1424_v31 = vadd.f32 %v1563_v3, %v1401_v30 }
 0x39d   :  { %v1398_v32 = vpop.xlane.xlu1 %1397 }
 0x39e   :  { %1441 = vst.msk [vmem:[%s2399_s11 + $0x78] sm:$0xff] %vm1425_vm8, %v1424_v31  ;;  %v1423_v33 = vadd.f32 %v1563_v3, %v1398_v32 }
 0x3a0   :  { %1440 = vst.msk [vmem:[%s2399_s11 + $0x70] sm:$0xff] %vm1425_vm8, %v1423_v33 }

</bundles_post_ra>
